<compile_context>
chip_gen: v6e
topology: v6e:2x2x1
jax: 0.10.0
libtpu: 0.0.40
codegen_flags: <defaults>
</compile_context>

<pallas_src>
import numpy as np

import jax
import jax.numpy as jnp
from jax.experimental import pallas as pl
from jax.experimental.pallas import tpu as pltpu

DROP_P = 0.2
_INV_KEEP = 1.0 / (1.0 - DROP_P)
# keep element iff uniform-uint32 >= DROP_P * 2^32
_KEEP_THRESHOLD = int(round(DROP_P * (1 << 32)))        # 858993459
_GOLDEN = 0x9E3779B9


def _round_up(n, m):
    return ((n + m - 1) // m) * m


def _mix32(x):
    """Trimmed lowbias32-style mixer: 2 multiplies + 1 xorshift (~6 VPU ops/elem)."""
    x = x * jnp.uint32(0x7FEB352D)
    x = x ^ (x >> 15)
    x = x * jnp.uint32(0x846CA68B)
    return x


def _keep_mask(rows_u32, cols_u32, seed_u32, h_total):
    """Deterministic per-element keep mask; identical in kernel and reference."""
    ctr = rows_u32 * jnp.uint32(h_total) + cols_u32
    bits = _mix32(ctr ^ (seed_u32 * jnp.uint32(_GOLDEN)))
    return bits >= jnp.uint32(_KEEP_THRESHOLD)


def _make_kernel(h_total):
    def mlp_kernel(seed_ref, x_ref, w1_ref, w2_ref, o_ref):
        i = pl.program_id(0)                     # batch tile
        j = pl.program_id(1)                     # H chunk (reduction axis)
        tm = x_ref.shape[0]
        th = w1_ref.shape[1]

        # fc1 chunk: [tm, D](bf16) x [D, th](bf16) -> [tm, th] f32 on the MXU.
        # w1 was pre-transposed in the wrapper, so no in-kernel relayout.
        h = jnp.dot(x_ref[...], w1_ref[...], preferred_element_type=jnp.float32)

        # Dropout(p=0.2), training semantics.  Counter = global_row * H + global_col,
        # so the randoms are unique per element and independent of the tiling.
        rows = (jax.lax.broadcasted_iota(jnp.int32, (tm, th), 0) + i * tm).astype(jnp.uint32)
        cols = (jax.lax.broadcasted_iota(jnp.int32, (tm, th), 1) + j * th).astype(jnp.uint32)
        keep = _keep_mask(rows, cols, seed_ref[0].astype(jnp.uint32), h_total)
        h = jnp.where(keep, h, 0.0)

        # fc2 (out_features=1): VPU multiply by the [1, th] weight chunk + lane
        # reduction (XLU) -> [tm] partial sum for this H chunk.
        part = jnp.sum(h * w2_ref[...], axis=-1)                  # [tm]

        # Accumulate into the resident [1, tm] output block (constant index across j).
        @pl.when(j == 0)
        def _():
            o_ref[...] = jnp.zeros_like(o_ref)

        o_ref[...] += part[None, :]

        # Fold the 1/(1-p) rescale onto the [tm]-sized result at the last H step.
        @pl.when(j == pl.num_programs(1) - 1)
        def _():
            o_ref[...] *= jnp.float32(_INV_KEEP)

    return mlp_kernel


def _pick_tm(B, block_m):
    """Batch tile: lane-dense when tiled, >=2 tiles when B allows, divisor-of-B preferred."""
    if B <= 128:
        return _round_up(B, 8)                   # single tile; block == full padded dim
    cap = _round_up(block_m, 128)
    tm = min(cap, _round_up((B + 1) // 2, 128))  # at least 2 tiles for megacore sharding
    if B % tm != 0:
        for cand in range(tm, 127, -128):        # prefer a tile that divides B (no pad pass)
            if B % cand == 0:
                return cand
    return tm


def _pick_th(H, block_h):
    """H chunk: full H when small, else the largest lane-aligned chunk dividing H."""
    if H <= max(block_h, 128):
        return H, 1
    target = min(_round_up(block_h, 128), (H // 128) * 128)
    for cand in range(target, 127, -128):
        if H % cand == 0:
            return cand, H // cand
    return H, 1                                   # fall back to a single resident chunk


def mlp_forward(x, w1, w2, seed, *, block_m=512, block_h=512):
    """x: [B, D], w1: [H, D] (torch layout), w2: [1, H] (torch layout) -> [B] f32.

    Matches MLP.forward(x) with dropout active (training semantics, p=0.2).
    """
    x = jnp.asarray(x)
    w1 = jnp.asarray(w1)
    w2 = jnp.asarray(w2)
    B, D = x.shape
    H, D2 = w1.shape
    assert D2 == D and w2.shape == (1, H)

    # One-time layout / dtype prep in XLA (outside the kernel, not per grid step):
    #   * w1 -> [D, H] so the kernel contracts the RHS over its leading dim,
    #   * x, w1 -> bf16 for the MXU (accumulation stays f32 inside the kernel),
    #   * w2 stays f32 for the VPU fc2 reduce.
    xb = x.astype(jnp.bfloat16)
    w1t = w1.T.astype(jnp.bfloat16)               # [D, H]
    w2f = w2.astype(jnp.float32)                  # [1, H]

    tm = _pick_tm(B, block_m)
    b_pad = _round_up(B, tm)
    if b_pad != B:
        xb = jnp.pad(xb, ((0, b_pad - B), (0, 0)))
    num_m = b_pad // tm

    th, num_h = _pick_th(H, block_h)

    seed_arr = jnp.asarray([seed], dtype=jnp.int32)

    # Explicit VMEM budget: x tile (bf16, double-buffered) + weight chunks + output
    # blocks + the [tm, th] f32 temporaries (h, bits, mask, product), with 2x headroom.
    w_bufs = 1 if num_h == 1 else 2
    vmem_need = (2 * tm * D * 2
                 + w_bufs * (D * th * 2 + th * 4)
                 + 2 * tm * 4
                 + 6 * tm * th * 4)
    vmem_limit = int(min(64 * 1024 * 1024, max(32 * 1024 * 1024, 2 * vmem_need)))

    kernel = _make_kernel(H)

    def run(single_buffer_weights):
        w_kw = {"pipeline_mode": pl.Buffered(1)} if single_buffer_weights else {}
        return pl.pallas_call(
            kernel,
            out_shape=jax.ShapeDtypeStruct((1, b_pad), jnp.float32),
            grid=(num_m, num_h),
            in_specs=[
                pl.BlockSpec(memory_space=pltpu.MemorySpace.SMEM),        # seed scalar
                pl.BlockSpec((tm, D), lambda i, j: (i, 0)),               # x batch tile
                pl.BlockSpec((D, th), lambda i, j: (0, j), **w_kw),       # w1 chunk [D, th]
                pl.BlockSpec((1, th), lambda i, j: (0, j), **w_kw),       # w2 chunk [1, th]
            ],
            out_specs=pl.BlockSpec((1, tm), lambda i, j: (0, i)),         # lane-dense row
            compiler_params=pltpu.CompilerParams(
                dimension_semantics=("parallel", "arbitrary"),
                vmem_limit_bytes=vmem_limit),
        )(seed_arr, xb, w1t, w2f)

    if num_h == 1:
        # Weight blocks never change -> single-buffer them (halves resident footprint).
        try:
            out = run(True)
        except Exception:
            # This jax version rejects pl.Buffered(1); fall back to default buffering.
            out = run(False)
    else:
        out = run(False)

    return out.reshape(-1)[:B]                    # .view(-1)


def mlp_reference(x, w1, w2, seed):
    """Plain-JAX reference with the identical bf16 inputs and hash-based dropout mask."""
    B, _ = x.shape
    H = w1.shape[0]
    xb = jnp.asarray(x).astype(jnp.bfloat16)
    w1b = jnp.asarray(w1).astype(jnp.bfloat16)
    h = jnp.dot(xb, w1b.T, preferred_element_type=jnp.float32)
    rows = jax.lax.broadcasted_iota(jnp.int32, (B, H), 0).astype(jnp.uint32)
    cols = jax.lax.broadcasted_iota(jnp.int32, (B, H), 1).astype(jnp.uint32)
    keep = _keep_mask(rows, cols, jnp.uint32(seed), H)
    h = jnp.where(keep, h, 0.0)
    out = jnp.dot(h, jnp.asarray(w2, jnp.float32).T,
                  preferred_element_type=jnp.float32).reshape(-1)
    return out * jnp.float32(_INV_KEEP)


if __name__ == "__main__":
    # Small shapes consistent with the module: batch=8, input_dim=16, n_units=32
    B, D, H = 8, 16, 32

    key = jax.random.PRNGKey(0)
    kx, k1, k2 = jax.random.split(key, 3)

    x = jax.random.normal(kx, (B, D), dtype=jnp.float32)

    # nn.Linear(bias=False) default init: U[-1/sqrt(fan_in), +1/sqrt(fan_in)]
    bound1 = 1.0 / float(np.sqrt(D))
    bound2 = 1.0 / float(np.sqrt(H))
    w1 = jax.random.uniform(k1, (H, D), jnp.float32, -bound1, bound1)
    w2 = jax.random.uniform(k2, (1, H), jnp.float32, -bound2, bound2)

    out = jax.block_until_ready(mlp_forward(x, w1, w2, seed=1234))

    assert out.shape == (B,), out.shape
    assert out.dtype == jnp.float32
    assert bool(jnp.all(jnp.isfinite(out)))

    # Check against a plain-JAX reference that uses the same deterministic dropout mask
    # and the same bf16 matmul inputs.
    ref = jax.block_until_ready(mlp_reference(x, w1, w2, seed=1234))
    np.testing.assert_allclose(np.asarray(out), np.asarray(ref), rtol=1e-3, atol=1e-3)

    print("KERNEL_OK")
</pallas_src>

<mosaic_0001>
module attributes {stable_mosaic.version = 11 : i64} {
  func.func @mlp_kernel(%arg0: i32, %arg1: i32, %arg2: memref<1xi32, #tpu.memory_space<smem>>, %arg3: memref<8x16xbf16, #tpu.memory_space<vmem>>, %arg4: memref<16x32xbf16, #tpu.memory_space<vmem>>, %arg5: memref<1x32xf32, #tpu.memory_space<vmem>>, %arg6: memref<1x8xf32, #tpu.memory_space<vmem>>) attributes {dimension_semantics = [#tpu.dimension_semantics<parallel>, #tpu.dimension_semantics<arbitrary>], iteration_bounds = array<i64: 1, 1>, scalar_prefetch = 0 : i64, scratch_operands = 0 : i64, tpu.core_type = #tpu.core_type<tc>, window_params = [{transform_indices = @transform_0, window_bounds = array<i64: 1>}, {transform_indices = @transform_1, window_bounds = array<i64: 8, 16>}, {pipeline_mode = #tpu.pipeline_mode<synchronous>, transform_indices = @transform_2, window_bounds = array<i64: 16, 32>}, {pipeline_mode = #tpu.pipeline_mode<synchronous>, transform_indices = @transform_3, window_bounds = array<i64: 1, 32>}, {transform_indices = @transform_4, window_bounds = array<i64: 1, 8>}]} {
    %c0 = arith.constant 0 : index
    %c0_0 = arith.constant 0 : index
    %0 = vector.load %arg3[%c0, %c0_0] : memref<8x16xbf16, #tpu.memory_space<vmem>>, vector<8x16xbf16>
    %c0_1 = arith.constant 0 : index
    %c0_2 = arith.constant 0 : index
    %1 = vector.load %arg4[%c0_1, %c0_2] : memref<16x32xbf16, #tpu.memory_space<vmem>>, vector<16x32xbf16>
    %cst = arith.constant dense<0.000000e+00> : vector<8x32xf32>
    %2 = tpu.matmul %0, %1, %cst {dimension_numbers = #tpu.dot_dimension_numbers<[1], [0], [0], [1], [0, 0, 1, 1], [], []>} : vector<8x16xbf16>, vector<16x32xbf16>, vector<8x32xf32> -> vector<8x32xf32>
    %3 = tpu.iota {dimensions = array<i32: 0>} : vector<8x32xi32>
    %c8_i32 = arith.constant 8 : i32
    %4 = arith.muli %arg0, %c8_i32 : i32
    %5 = vector.broadcast %4 : i32 to vector<8x32xi32>
    %6 = arith.addi %3, %5 : vector<8x32xi32>
    %7 = tpu.iota {dimensions = array<i32: 1>} : vector<8x32xi32>
    %c32_i32 = arith.constant 32 : i32
    %8 = arith.muli %arg1, %c32_i32 : i32
    %9 = vector.broadcast %8 : i32 to vector<8x32xi32>
    %10 = arith.addi %7, %9 : vector<8x32xi32>
    %c0_3 = arith.constant 0 : index
    %11 = memref.load %arg2[%c0_3] : memref<1xi32, #tpu.memory_space<smem>>
    %c32_i32_4 = arith.constant 32 : i32
    %12 = vector.broadcast %c32_i32_4 : i32 to vector<8x32xi32>
    %13 = arith.muli %6, %12 : vector<8x32xi32>
    %14 = arith.addi %13, %10 : vector<8x32xi32>
    %c-1640531527_i32 = arith.constant -1640531527 : i32
    %15 = arith.muli %11, %c-1640531527_i32 : i32
    %16 = vector.broadcast %15 : i32 to vector<8x32xi32>
    %17 = arith.xori %14, %16 : vector<8x32xi32>
    %c2146121005_i32 = arith.constant 2146121005 : i32
    %18 = vector.broadcast %c2146121005_i32 : i32 to vector<8x32xi32>
    %19 = arith.muli %17, %18 : vector<8x32xi32>
    %c15_i32 = arith.constant 15 : i32
    %20 = vector.broadcast %c15_i32 : i32 to vector<8x32xi32>
    %21 = arith.shrui %19, %20 : vector<8x32xi32>
    %22 = arith.xori %19, %21 : vector<8x32xi32>
    %c-2073254261_i32 = arith.constant -2073254261 : i32
    %23 = vector.broadcast %c-2073254261_i32 : i32 to vector<8x32xi32>
    %24 = arith.muli %22, %23 : vector<8x32xi32>
    %c858993459_i32 = arith.constant 858993459 : i32
    %25 = vector.broadcast %c858993459_i32 : i32 to vector<8x32xi32>
    %26 = arith.cmpi uge, %24, %25 : vector<8x32xi32>
    %cst_5 = arith.constant 0.000000e+00 : f32
    %27 = vector.broadcast %cst_5 : f32 to vector<8x32xf32>
    %28 = arith.select %26, %2, %27 : vector<8x32xi1>, vector<8x32xf32>
    %c0_6 = arith.constant 0 : index
    %c0_7 = arith.constant 0 : index
    %29 = vector.load %arg5[%c0_6, %c0_7] : memref<1x32xf32, #tpu.memory_space<vmem>>, vector<1x32xf32>
    %30 = vector.broadcast %29 : vector<1x32xf32> to vector<8x32xf32>
    %31 = arith.mulf %28, %30 : vector<8x32xf32>
    %cst_8 = arith.constant dense<0.000000e+00> : vector<8xf32>
    %32 = vector.multi_reduction <add>, %31, %cst_8 [1] : vector<8x32xf32> to vector<8xf32>
    %c0_i32 = arith.constant 0 : i32
    %33 = arith.cmpi eq, %arg1, %c0_i32 : i32
    %34 = arith.extui %33 : i1 to i32
    %c0_i32_9 = arith.constant 0 : i32
    %35 = arith.cmpi ne, %34, %c0_i32_9 : i32
    scf.if %35 {
      %cst_16 = arith.constant 0.000000e+00 : f32
      %43 = vector.broadcast %cst_16 : f32 to vector<1x8xf32>
      %c0_17 = arith.constant 0 : index
      %c0_18 = arith.constant 0 : index
      %44 = vector.load %arg6[%c0_17, %c0_18] : memref<1x8xf32, #tpu.memory_space<vmem>>, vector<1x8xf32>
      tpu.vector_store %arg6[%c0_17, %c0_18], %43 {strides = array<i32>} : memref<1x8xf32, #tpu.memory_space<vmem>>, vector<1x8xf32>,
    } else {
    }
    %c0_10 = arith.constant 0 : index
    %c0_11 = arith.constant 0 : index
    %36 = vector.load %arg6[%c0_10, %c0_11] : memref<1x8xf32, #tpu.memory_space<vmem>>, vector<1x8xf32>
    %37 = vector.shape_cast %32 : vector<8xf32> to vector<1x8xf32>
    %38 = arith.addf %36, %37 : vector<1x8xf32>
    %c0_12 = arith.constant 0 : index
    %c0_13 = arith.constant 0 : index
    %39 = vector.load %arg6[%c0_12, %c0_13] : memref<1x8xf32, #tpu.memory_space<vmem>>, vector<1x8xf32>
    tpu.vector_store %arg6[%c0_12, %c0_13], %38 {strides = array<i32>} : memref<1x8xf32, #tpu.memory_space<vmem>>, vector<1x8xf32>,
    %c0_i32_14 = arith.constant 0 : i32
    %40 = arith.cmpi eq, %arg1, %c0_i32_14 : i32
    %41 = arith.extui %40 : i1 to i32
    %c0_i32_15 = arith.constant 0 : i32
    %42 = arith.cmpi ne, %41, %c0_i32_15 : i32
    scf.if %42 {
      %c0_16 = arith.constant 0 : index
      %c0_17 = arith.constant 0 : index
      %43 = vector.load %arg6[%c0_16, %c0_17] : memref<1x8xf32, #tpu.memory_space<vmem>>, vector<1x8xf32>
      %cst_18 = arith.constant 1.250000e+00 : f32
      %44 = vector.broadcast %cst_18 : f32 to vector<1x8xf32>
      %45 = arith.mulf %43, %44 : vector<1x8xf32>
      %c0_19 = arith.constant 0 : index
      %c0_20 = arith.constant 0 : index
      %46 = vector.load %arg6[%c0_19, %c0_20] : memref<1x8xf32, #tpu.memory_space<vmem>>, vector<1x8xf32>
      tpu.vector_store %arg6[%c0_19, %c0_20], %45 {strides = array<i32>} : memref<1x8xf32, #tpu.memory_space<vmem>>, vector<1x8xf32>,
    } else {
    }
    return
  }
  func.func @transform_0(%arg0: i32, %arg1: i32) -> i32 {
    %c0_i32 = arith.constant 0 : i32
    %c0_i32_0 = arith.constant 0 : i32
    return %c0_i32 : i32
  }
  func.func @transform_1(%arg0: i32, %arg1: i32) -> (i32, i32) {
    %c0_i32 = arith.constant 0 : i32
    %c0_i32_0 = arith.constant 0 : i32
    return %arg0, %c0_i32 : i32, i32
  }
  func.func @transform_2(%arg0: i32, %arg1: i32) -> (i32, i32) {
    %c0_i32 = arith.constant 0 : i32
    %c0_i32_0 = arith.constant 0 : i32
    return %c0_i32, %arg1 : i32, i32
  }
  func.func @transform_3(%arg0: i32, %arg1: i32) -> (i32, i32) {
    %c0_i32 = arith.constant 0 : i32
    %c0_i32_0 = arith.constant 0 : i32
    return %c0_i32, %arg1 : i32, i32
  }
  func.func @transform_4(%arg0: i32, %arg1: i32) -> (i32, i32) {
    %c0_i32 = arith.constant 0 : i32
    %c0_i32_0 = arith.constant 0 : i32
    return %c0_i32, %arg0 : i32, i32
  }
}

module attributes {stable_mosaic.version = 11 : i64} {
  func.func @mlp_kernel(%arg0: i32, %arg1: i32, %arg2: memref<1xi32, #tpu.memory_space<smem>>, %arg3: memref<8x16xbf16, #tpu.memory_space<vmem>>, %arg4: memref<16x32xbf16, #tpu.memory_space<vmem>>, %arg5: memref<1x32xf32, #tpu.memory_space<vmem>>, %arg6: memref<1x8xf32, #tpu.memory_space<vmem>>) attributes {dimension_semantics = [#tpu.dimension_semantics<parallel>, #tpu.dimension_semantics<arbitrary>], iteration_bounds = array<i64: 1, 1>, scalar_prefetch = 0 : i64, scratch_operands = 0 : i64, tpu.core_type = #tpu.core_type<tc>, window_params = [{transform_indices = @transform_0, window_bounds = array<i64: 1>}, {transform_indices = @transform_1, window_bounds = array<i64: 8, 16>}, {transform_indices = @transform_2, window_bounds = array<i64: 16, 32>}, {transform_indices = @transform_3, window_bounds = array<i64: 1, 32>}, {transform_indices = @transform_4, window_bounds = array<i64: 1, 8>}]} {
    %c0 = arith.constant 0 : index
    %c0_0 = arith.constant 0 : index
    %0 = vector.load %arg3[%c0, %c0_0] : memref<8x16xbf16, #tpu.memory_space<vmem>>, vector<8x16xbf16>
    %c0_1 = arith.constant 0 : index
    %c0_2 = arith.constant 0 : index
    %1 = vector.load %arg4[%c0_1, %c0_2] : memref<16x32xbf16, #tpu.memory_space<vmem>>, vector<16x32xbf16>
    %cst = arith.constant dense<0.000000e+00> : vector<8x32xf32>
    %2 = tpu.matmul %0, %1, %cst {dimension_numbers = #tpu.dot_dimension_numbers<[1], [0], [0], [1], [0, 0, 1, 1], [], []>} : vector<8x16xbf16>, vector<16x32xbf16>, vector<8x32xf32> -> vector<8x32xf32>
    %3 = tpu.iota {dimensions = array<i32: 0>} : vector<8x32xi32>
    %c8_i32 = arith.constant 8 : i32
    %4 = arith.muli %arg0, %c8_i32 : i32
    %5 = vector.broadcast %4 : i32 to vector<8x32xi32>
    %6 = arith.addi %3, %5 : vector<8x32xi32>
    %7 = tpu.iota {dimensions = array<i32: 1>} : vector<8x32xi32>
    %c32_i32 = arith.constant 32 : i32
    %8 = arith.muli %arg1, %c32_i32 : i32
    %9 = vector.broadcast %8 : i32 to vector<8x32xi32>
    %10 = arith.addi %7, %9 : vector<8x32xi32>
    %c0_3 = arith.constant 0 : index
    %11 = memref.load %arg2[%c0_3] : memref<1xi32, #tpu.memory_space<smem>>
    %c32_i32_4 = arith.constant 32 : i32
    %12 = vector.broadcast %c32_i32_4 : i32 to vector<8x32xi32>
    %13 = arith.muli %6, %12 : vector<8x32xi32>
    %14 = arith.addi %13, %10 : vector<8x32xi32>
    %c-1640531527_i32 = arith.constant -1640531527 : i32
    %15 = arith.muli %11, %c-1640531527_i32 : i32
    %16 = vector.broadcast %15 : i32 to vector<8x32xi32>
    %17 = arith.xori %14, %16 : vector<8x32xi32>
    %c2146121005_i32 = arith.constant 2146121005 : i32
    %18 = vector.broadcast %c2146121005_i32 : i32 to vector<8x32xi32>
    %19 = arith.muli %17, %18 : vector<8x32xi32>
    %c15_i32 = arith.constant 15 : i32
    %20 = vector.broadcast %c15_i32 : i32 to vector<8x32xi32>
    %21 = arith.shrui %19, %20 : vector<8x32xi32>
    %22 = arith.xori %19, %21 : vector<8x32xi32>
    %c-2073254261_i32 = arith.constant -2073254261 : i32
    %23 = vector.broadcast %c-2073254261_i32 : i32 to vector<8x32xi32>
    %24 = arith.muli %22, %23 : vector<8x32xi32>
    %c858993459_i32 = arith.constant 858993459 : i32
    %25 = vector.broadcast %c858993459_i32 : i32 to vector<8x32xi32>
    %26 = arith.cmpi uge, %24, %25 : vector<8x32xi32>
    %cst_5 = arith.constant 0.000000e+00 : f32
    %27 = vector.broadcast %cst_5 : f32 to vector<8x32xf32>
    %28 = arith.select %26, %2, %27 : vector<8x32xi1>, vector<8x32xf32>
    %c0_6 = arith.constant 0 : index
    %c0_7 = arith.constant 0 : index
    %29 = vector.load %arg5[%c0_6, %c0_7] : memref<1x32xf32, #tpu.memory_space<vmem>>, vector<1x32xf32>
    %30 = vector.broadcast %29 : vector<1x32xf32> to vector<8x32xf32>
    %31 = arith.mulf %28, %30 : vector<8x32xf32>
    %cst_8 = arith.constant dense<0.000000e+00> : vector<8xf32>
    %32 = vector.multi_reduction <add>, %31, %cst_8 [1] : vector<8x32xf32> to vector<8xf32>
    %c0_i32 = arith.constant 0 : i32
    %33 = arith.cmpi eq, %arg1, %c0_i32 : i32
    %34 = arith.extui %33 : i1 to i32
    %c0_i32_9 = arith.constant 0 : i32
    %35 = arith.cmpi ne, %34, %c0_i32_9 : i32
    scf.if %35 {
      %cst_16 = arith.constant 0.000000e+00 : f32
      %43 = vector.broadcast %cst_16 : f32 to vector<1x8xf32>
      %c0_17 = arith.constant 0 : index
      %c0_18 = arith.constant 0 : index
      %44 = vector.load %arg6[%c0_17, %c0_18] : memref<1x8xf32, #tpu.memory_space<vmem>>, vector<1x8xf32>
      tpu.vector_store %arg6[%c0_17, %c0_18], %43 {strides = array<i32>} : memref<1x8xf32, #tpu.memory_space<vmem>>, vector<1x8xf32>,
    } else {
    }
    %c0_10 = arith.constant 0 : index
    %c0_11 = arith.constant 0 : index
    %36 = vector.load %arg6[%c0_10, %c0_11] : memref<1x8xf32, #tpu.memory_space<vmem>>, vector<1x8xf32>
    %37 = vector.shape_cast %32 : vector<8xf32> to vector<1x8xf32>
    %38 = arith.addf %36, %37 : vector<1x8xf32>
    %c0_12 = arith.constant 0 : index
    %c0_13 = arith.constant 0 : index
    %39 = vector.load %arg6[%c0_12, %c0_13] : memref<1x8xf32, #tpu.memory_space<vmem>>, vector<1x8xf32>
    tpu.vector_store %arg6[%c0_12, %c0_13], %38 {strides = array<i32>} : memref<1x8xf32, #tpu.memory_space<vmem>>, vector<1x8xf32>,
    %c0_i32_14 = arith.constant 0 : i32
    %40 = arith.cmpi eq, %arg1, %c0_i32_14 : i32
    %41 = arith.extui %40 : i1 to i32
    %c0_i32_15 = arith.constant 0 : i32
    %42 = arith.cmpi ne, %41, %c0_i32_15 : i32
    scf.if %42 {
      %c0_16 = arith.constant 0 : index
      %c0_17 = arith.constant 0 : index
      %43 = vector.load %arg6[%c0_16, %c0_17] : memref<1x8xf32, #tpu.memory_space<vmem>>, vector<1x8xf32>
      %cst_18 = arith.constant 1.250000e+00 : f32
      %44 = vector.broadcast %cst_18 : f32 to vector<1x8xf32>
      %45 = arith.mulf %43, %44 : vector<1x8xf32>
      %c0_19 = arith.constant 0 : index
      %c0_20 = arith.constant 0 : index
      %46 = vector.load %arg6[%c0_19, %c0_20] : memref<1x8xf32, #tpu.memory_space<vmem>>, vector<1x8xf32>
      tpu.vector_store %arg6[%c0_19, %c0_20], %45 {strides = array<i32>} : memref<1x8xf32, #tpu.memory_space<vmem>>, vector<1x8xf32>,
    } else {
    }
    return
  }
  func.func @transform_0(%arg0: i32, %arg1: i32) -> i32 {
    %c0_i32 = arith.constant 0 : i32
    %c0_i32_0 = arith.constant 0 : i32
    return %c0_i32 : i32
  }
  func.func @transform_1(%arg0: i32, %arg1: i32) -> (i32, i32) {
    %c0_i32 = arith.constant 0 : i32
    %c0_i32_0 = arith.constant 0 : i32
    return %arg0, %c0_i32 : i32, i32
  }
  func.func @transform_2(%arg0: i32, %arg1: i32) -> (i32, i32) {
    %c0_i32 = arith.constant 0 : i32
    %c0_i32_0 = arith.constant 0 : i32
    return %c0_i32, %arg1 : i32, i32
  }
  func.func @transform_3(%arg0: i32, %arg1: i32) -> (i32, i32) {
    %c0_i32 = arith.constant 0 : i32
    %c0_i32_0 = arith.constant 0 : i32
    return %c0_i32, %arg1 : i32, i32
  }
  func.func @transform_4(%arg0: i32, %arg1: i32) -> (i32, i32) {
    %c0_i32 = arith.constant 0 : i32
    %c0_i32_0 = arith.constant 0 : i32
    return %c0_i32, %arg0 : i32, i32
  }
}

</mosaic_0001>

<bundles_post_ra>
// kernel: tpu_custom_call.1
= control target key start
LH: loop header
LB: loop body
LE: loop exit
PB: predicated region body
PF: predicated region fallthrough
CT: control target
= control target key end

     0   :  { %10 = vsyncpa [#allocation4], 0  ;;  %s409_s0 = inlined_call_operand.<no memory space> [shape: s32[1], index: 0, kind: input, shape index: {}]   ;;  %s410_s1 = inlined_call_operand.hbm [shape: bf16[8,16], index: 1, kind: input, shape index: {}]   ;;  %s411_s2 = inlined_call_operand.hbm [shape: bf16[16,32], index: 2, kind: input, shape index: {}]   ;;  %s412_s3 = inlined_call_operand.vmem [shape: f32[1,32], index: 3, kind: input, shape index: {}]   ;;  %s413_s4 = inlined_call_operand.hbm [shape: f32[1,8], index: 4, kind: output, shape index: {}]  }
   0x1   :  { %11 = vsyncpa [#allocation7], 0 }
   0x2   :  { %12 = vsyncpa [#allocation5], 0  ;;  %s357_s15 = smov [#allocation3]   ;;  %s358_s17 = smov [#allocation6]  }
   0x3   :  { %s21_s16 = sshll.u32 %s357_s15, 4  ;;  %s30_s18 = sshll.u32 %s358_s17, 4  ;;  %s22_s16 = int_to_ptr.vmem [resolvable:$true] %s21_s16  ;;  %s31_s18 = int_to_ptr.vmem [resolvable:$true] %s30_s18 }
   0x4   :  { %s299_s19 = scalar_lea.vmem %s22_s16, 64  ;;  %p304_p1 = scmp.lt.s32.totalorder %s22_s16, %s22_s16 }
   0x5   :  { %p300_p0 = scmp.ne.s32.totalorder %s22_s16, %s299_s19  ;;  %p305_p2 = scmp.lt.s32.totalorder %s299_s19, %s299_s19 }
   0x7   :  { %p306_p3 = por %p305_p2, %p304_p1 }
   0x9   :  { %p307_p4 = pnand %p306_p3, %p300_p0 }
   0xb   :  { %310 = shalt.err (!%p307_p4)
}
   0xc   :  { %24 = dma.hbm_to_vmem [thread:$0]  %s410_s1, 64, %s22_s16, [#allocation4]  }
   0xd   :  { %s319_s22 = scalar_lea.vmem %s31_s18, 128  ;;  %p324_p6 = scmp.lt.s32.totalorder %s31_s18, %s31_s18 }
   0xe   :  { %p320_p5 = scmp.ne.s32.totalorder %s31_s18, %s319_s22  ;;  %p325_p7 = scmp.lt.s32.totalorder %s319_s22, %s319_s22 }
  0x10   :  { %p326_p8 = por %p325_p7, %p324_p6 }
  0x12   :  { %p327_p9 = pnand %p326_p8, %p320_p5 }
  0x14   :  { %330 = shalt.err (!%p327_p9)
}
  0x15   :  { %s359_s23 = smov 64   ;;  %s360_s24 = smov 4  }
  0x16   :  { %36 = dma.hbm_to_vmem [thread:$0]  %s411_s2, 128, %s31_s18, [#allocation7], %s359_s23, %s359_s23, %s360_s24  }
  0x17   :  { %351 = dma.done.wait [#allocation4], 64  }
  0x18   :  { %352 = vsyncadd [#allocation4], 4294967232 }
  0x19   :  { %353 = dma.done.wait [#allocation7], 128  }
  0x1a   :  { %354 = vsyncadd [#allocation7], 4294967168  ;;  %vm137_vm0 = vcmask 57344   ;;  %v361_v0 = vmov 0.0   ;;  %vm362_vm1 = vmmov 0   ;;  %v290_v1 = vld [vmem:[#allocation6] sm:$0xff]   ;;  %v99_v3 = vlaneseq }
  0x1b   :  { %274 = vmatprep.subr.bf16.mxu0 %v361_v0  ;;  %138 = vst.msk [vmem:[#allocation8] sm:$0x1] %vm137_vm0, %v361_v0  ;;  %276 = vmatprep.mubr.msk.bf16.mxu0 %vm362_vm1, %v361_v0  ;;  %v46_v2 = vld [vmem:[#allocation3] sm:$0xf]  ;;  %vm55_vm2 = vcmask 130048   ;;  %vm129_vm4 = vcmask 261120  }
  0x1c   :  { %275 = vmatpush3.bf16.msra.mxu0 %v290_v1  ;;  %v100_v4 = vshrl.u32 %v99_v3, 7  ;;  %v105_v5 = vand.u32 127, %v99_v3  ;;  %s112_s27 = smul.u32 2654435769, %s409_s0  ;;  %v271_v14 = vld [vmem:[%s412_s3] ss:$0 sm:$0xff] }
  0x1d   :  { %v363_v22 = vmov 0   ;;  %v364_v23 = vmov 1966171168   ;;  %s365_s0 = smov [#allocation8]  }
  0x1e   :  { %v110_v6 = vmul.u32 32, %v100_v4  ;;  %v113_v8 = vstv %s112_s27  ;;  %289 = vset.pattern.permute.xlu0 %v363_v22  ;;  %v178_v24 = vunpack.c.l.s4 %v364_v23  ;;  %v143_v26 = vsub.s32 0, %v100_v4  ;;  %s259_s3 = sshll.u32 %s365_s0, 4  ;;  %s260_s3 = int_to_ptr.vmem [resolvable:$true] %s259_s3 }
  0x1f   :  { %277 = vmatmul.mubr.msk.bf16.vlgmr.msra.gmra.mxu0 %vm55_vm2, %v46_v2  ;;  %v147_v27 = vsub.s32 1, %v100_v4  ;;  %v151_v28 = vsub.s32 2, %v100_v4  ;;  %v155_v29 = vsub.s32 3, %v100_v4  ;;  %v159_v30 = vsub.s32 4, %v100_v4  ;;  %s331_s30 = scalar_lea.vmem %s260_s3, 16  ;;  %s335_s5 = scalar_lea.vmem %s260_s3, 32 }
  0x20   :  { %v111_v7 = vadd.s32 %v110_v6, %v105_v5  ;;  %v179_v25 = vunpack.c.0.s8 %v178_v24  ;;  %v163_v31 = vsub.s32 5, %v100_v4  ;;  %v167_v32 = vsub.s32 6, %v100_v4  ;;  %p332_p10 = scmp.ne.s32.totalorder %s260_s3, %s331_s30  ;;  %p336_p11 = scmp.lt.s32.totalorder %s260_s3, %s260_s3 }
  0x21   :  { %v171_v33 = vsub.s32 7, %v100_v4  ;;  %v227_v57 = vsub.s32 %v105_v5, %v100_v4  ;;  %p337_p12 = scmp.lt.s32.totalorder %s335_s5, %s331_s30 }
  0x22   :  { %v114_v9 = vxor.u32 %v113_v8, %v111_v7  ;;  %v182_v35 = vsub.s32 %v179_v25, %v100_v4  ;;  %v139_v61 = vld [vmem:[#allocation8] sm:$0x1] }
  0x23   :  { %p338_p13 = por %p337_p12, %p336_p11 }
  0x24   :  { %v115_v10 = vmul.u32 2146121005, %v114_v9 }
  0x25   :  { %p339_p0 = pnand %p338_p13, %p332_p10 }
  0x26   :  { %v116_v11 = vshrl.u32 %v115_v10, 15 }
  0x28   :  { %v117_v12 = vxor.u32 %v116_v11, %v115_v10 }
  0x2a   :  { %v118_v13 = vmul.u32 2221713035, %v117_v12 }
  0x2c   :  { %vm119_vm3 = vcmp.ge.u32.totalorder %v118_v13, 858993459 }
  0xdf   :  { %v93_v15 = vpop.f32.mrf.mxu0 }
  0xe0   :  { %v120_v16 = vsel %vm119_vm3, %v93_v15, 0.0 }
  0xe1   :  { %v128_v17 = vmul.f32 %v271_v14, %v120_v16  ;;  %v278_v18 = vpop.f32.mrf.mxu0 }
  0xe3   :  { %v96_v19 = vpop.f32.mrf.mxu0  ;;  %v130_v20 = vsel %vm129_vm4, %v128_v17, 0.0 }
  0xe4   :  { %131 = vadd.xlane.f32.xlu0 %v130_v20 }
  0xe5   :  { %v279_v21 = vpop.f32.mrf.mxu0 }
 0x16d   :  { %v132_v34 = vpop.xlane.xlu0 %131 }
 0x16e   :  { %v144_v36 = vrot.slane %v132_v34, %v143_v26  ;;  %v148_v37 = vrot.slane %v132_v34, %v147_v27  ;;  %v152_v38 = vrot.slane %v132_v34, %v151_v28  ;;  %v156_v39 = vrot.slane %v132_v34, %v155_v29 }
 0x16f   :  { %v160_v40 = vrot.slane %v132_v34, %v159_v30  ;;  %v164_v41 = vrot.slane %v132_v34, %v163_v31  ;;  %v168_v42 = vrot.slane %v132_v34, %v167_v32  ;;  %v172_v43 = vrot.slane %v132_v34, %v171_v33 }
 0x170   :  { %v173_v44 = vcombine.low %v144_v36, %v148_v37  ;;  %v174_v45 = vcombine.low %v152_v38, %v156_v39 }
 0x171   :  { %v175_v46 = vcombine.low %v160_v40, %v164_v41  ;;  %v176_v47 = vcombine.low %v168_v42, %v172_v43 }
 0x172   :  { %v183_v48 = vrot.slane %v173_v44, %v182_v35  ;;  %v190_v49 = vrot.slane %v174_v45, %v182_v35 }
 0x173   :  { %v197_v50 = vrot.slane %v175_v46, %v182_v35  ;;  %v204_v51 = vrot.slane %v176_v47, %v182_v35 }
 0x174   :  { %v205_v52 = vcombine.low %v183_v48, %v190_v49 }
 0x175   :  { %v206_v53 = vcombine.low %v197_v50, %v204_v51 }
 0x176   :  { %v213_v54 = vrot.slane %v205_v52, %v182_v35 }
 0x177   :  { %v220_v55 = vrot.slane %v206_v53, %v182_v35 }
 0x179   :  { %v221_v56 = vcombine.low %v213_v54, %v220_v55 }
 0x17b   :  { %223 = vperm.xlu0 %289, %v221_v56  }
 0x1f6   :  { %v224_v58 = vpop.permute.xlu0 %223 }
 0x1f7   :  { %v228_v59 = vrot.slane %v224_v58, %v227_v57 }
 0x1f9   :  { %v235_v60 = vrot.slane %v228_v59, %v182_v35 }
 0x1fb   :  { %v242_v62 = vrot.slane %v235_v60, %v182_v35 }
 0x1fd   :  { %v244_v63 = vadd.f32 %v242_v62, %v139_v61 }
 0x1ff   :  { %246 = vst.msk [vmem:[#allocation8] sm:$0x1] %vm137_vm0, %v244_v63 }
 0x206   :  { %v250_v0 = vld [vmem:[#allocation8] sm:$0x1] }
 0x207   :  { %v251_v1 = vmul.f32 1.25, %v250_v0 }
 0x209   :  { %252 = vst.msk [vmem:[#allocation8] sm:$0x1] %vm137_vm0, %v251_v1 }
 0x20a   :  { %342 = shalt.err (!%p339_p0)
}
 0x20b   :  { %262 = dma.vmem_to_hbm [thread:$0]  %s260_s3, 16, %s413_s4, [#allocation5]  }
 0x20c   :  { %355 = dma.done.wait [#allocation5], 16  }
 0x20d   :  { %356 = vsyncadd [#allocation5], 4294967280 }
 0x20e   :  { %266 = vsyncpa [#allocation4], 1 }
 0x20f   :  { %267 = vsyncpa [#allocation7], 1 }
 0x210   :  { %268 = vsyncpa [#allocation5], 1 }

// kernel: tpu_custom_call.1
= control target key start
LH: loop header
LB: loop body
LE: loop exit
PB: predicated region body
PF: predicated region fallthrough
CT: control target
= control target key end

     0   :  { %10 = vsyncpa [#allocation4], 0  ;;  %s409_s0 = inlined_call_operand.<no memory space> [shape: s32[1], index: 0, kind: input, shape index: {}]   ;;  %s410_s1 = inlined_call_operand.hbm [shape: bf16[8,16], index: 1, kind: input, shape index: {}]   ;;  %s411_s2 = inlined_call_operand.hbm [shape: bf16[16,32], index: 2, kind: input, shape index: {}]   ;;  %s412_s3 = inlined_call_operand.vmem [shape: f32[1,32], index: 3, kind: input, shape index: {}]   ;;  %s413_s4 = inlined_call_operand.hbm [shape: f32[1,8], index: 4, kind: output, shape index: {}]  }
   0x1   :  { %11 = vsyncpa [#allocation7], 0 }
   0x2   :  { %12 = vsyncpa [#allocation5], 0  ;;  %s357_s15 = smov [#allocation3]   ;;  %s358_s17 = smov [#allocation6]  }
   0x3   :  { %s21_s16 = sshll.u32 %s357_s15, 4  ;;  %s30_s18 = sshll.u32 %s358_s17, 4  ;;  %s22_s16 = int_to_ptr.vmem [resolvable:$true] %s21_s16  ;;  %s31_s18 = int_to_ptr.vmem [resolvable:$true] %s30_s18 }
   0x4   :  { %s299_s19 = scalar_lea.vmem %s22_s16, 64  ;;  %p304_p1 = scmp.lt.s32.totalorder %s22_s16, %s22_s16 }
   0x5   :  { %p300_p0 = scmp.ne.s32.totalorder %s22_s16, %s299_s19  ;;  %p305_p2 = scmp.lt.s32.totalorder %s299_s19, %s299_s19 }
   0x7   :  { %p306_p3 = por %p305_p2, %p304_p1 }
   0x9   :  { %p307_p4 = pnand %p306_p3, %p300_p0 }
   0xb   :  { %310 = shalt.err (!%p307_p4)
}
   0xc   :  { %24 = dma.hbm_to_vmem [thread:$0]  %s410_s1, 64, %s22_s16, [#allocation4]  }
   0xd   :  { %s319_s22 = scalar_lea.vmem %s31_s18, 128  ;;  %p324_p6 = scmp.lt.s32.totalorder %s31_s18, %s31_s18 }
   0xe   :  { %p320_p5 = scmp.ne.s32.totalorder %s31_s18, %s319_s22  ;;  %p325_p7 = scmp.lt.s32.totalorder %s319_s22, %s319_s22 }
  0x10   :  { %p326_p8 = por %p325_p7, %p324_p6 }
  0x12   :  { %p327_p9 = pnand %p326_p8, %p320_p5 }
  0x14   :  { %330 = shalt.err (!%p327_p9)
}
  0x15   :  { %s359_s23 = smov 64   ;;  %s360_s24 = smov 4  }
  0x16   :  { %36 = dma.hbm_to_vmem [thread:$0]  %s411_s2, 128, %s31_s18, [#allocation7], %s359_s23, %s359_s23, %s360_s24  }
  0x17   :  { %351 = dma.done.wait [#allocation4], 64  }
  0x18   :  { %352 = vsyncadd [#allocation4], 4294967232 }
  0x19   :  { %353 = dma.done.wait [#allocation7], 128  }
  0x1a   :  { %354 = vsyncadd [#allocation7], 4294967168  ;;  %vm137_vm0 = vcmask 57344   ;;  %v361_v0 = vmov 0.0   ;;  %vm362_vm1 = vmmov 0   ;;  %v290_v1 = vld [vmem:[#allocation6] sm:$0xff]   ;;  %v99_v3 = vlaneseq }
  0x1b   :  { %274 = vmatprep.subr.bf16.mxu0 %v361_v0  ;;  %138 = vst.msk [vmem:[#allocation8] sm:$0x1] %vm137_vm0, %v361_v0  ;;  %276 = vmatprep.mubr.msk.bf16.mxu0 %vm362_vm1, %v361_v0  ;;  %v46_v2 = vld [vmem:[#allocation3] sm:$0xf]  ;;  %vm55_vm2 = vcmask 130048   ;;  %vm129_vm4 = vcmask 261120  }
  0x1c   :  { %275 = vmatpush3.bf16.msra.mxu0 %v290_v1  ;;  %v100_v4 = vshrl.u32 %v99_v3, 7  ;;  %v105_v5 = vand.u32 127, %v99_v3  ;;  %s112_s27 = smul.u32 2654435769, %s409_s0  ;;  %v271_v14 = vld [vmem:[%s412_s3] ss:$0 sm:$0xff] }
  0x1d   :  { %v363_v22 = vmov 0   ;;  %v364_v23 = vmov 1966171168   ;;  %s365_s0 = smov [#allocation8]  }
  0x1e   :  { %v110_v6 = vmul.u32 32, %v100_v4  ;;  %v113_v8 = vstv %s112_s27  ;;  %289 = vset.pattern.permute.xlu0 %v363_v22  ;;  %v178_v24 = vunpack.c.l.s4 %v364_v23  ;;  %v143_v26 = vsub.s32 0, %v100_v4  ;;  %s259_s3 = sshll.u32 %s365_s0, 4  ;;  %s260_s3 = int_to_ptr.vmem [resolvable:$true] %s259_s3 }
  0x1f   :  { %277 = vmatmul.mubr.msk.bf16.vlgmr.msra.gmra.mxu0 %vm55_vm2, %v46_v2  ;;  %v147_v27 = vsub.s32 1, %v100_v4  ;;  %v151_v28 = vsub.s32 2, %v100_v4  ;;  %v155_v29 = vsub.s32 3, %v100_v4  ;;  %v159_v30 = vsub.s32 4, %v100_v4  ;;  %s331_s30 = scalar_lea.vmem %s260_s3, 16  ;;  %s335_s5 = scalar_lea.vmem %s260_s3, 32 }
  0x20   :  { %v111_v7 = vadd.s32 %v110_v6, %v105_v5  ;;  %v179_v25 = vunpack.c.0.s8 %v178_v24  ;;  %v163_v31 = vsub.s32 5, %v100_v4  ;;  %v167_v32 = vsub.s32 6, %v100_v4  ;;  %p332_p10 = scmp.ne.s32.totalorder %s260_s3, %s331_s30  ;;  %p336_p11 = scmp.lt.s32.totalorder %s260_s3, %s260_s3 }
  0x21   :  { %v171_v33 = vsub.s32 7, %v100_v4  ;;  %v227_v57 = vsub.s32 %v105_v5, %v100_v4  ;;  %p337_p12 = scmp.lt.s32.totalorder %s335_s5, %s331_s30 }
  0x22   :  { %v114_v9 = vxor.u32 %v113_v8, %v111_v7  ;;  %v182_v35 = vsub.s32 %v179_v25, %v100_v4  ;;  %v139_v61 = vld [vmem:[#allocation8] sm:$0x1] }
  0x23   :  { %p338_p13 = por %p337_p12, %p336_p11 }
  0x24   :  { %v115_v10 = vmul.u32 2146121005, %v114_v9 }
  0x25   :  { %p339_p0 = pnand %p338_p13, %p332_p10 }
  0x26   :  { %v116_v11 = vshrl.u32 %v115_v10, 15 }
  0x28   :  { %v117_v12 = vxor.u32 %v116_v11, %v115_v10 }
  0x2a   :  { %v118_v13 = vmul.u32 2221713035, %v117_v12 }
  0x2c   :  { %vm119_vm3 = vcmp.ge.u32.totalorder %v118_v13, 858993459 }
  0xdf   :  { %v93_v15 = vpop.f32.mrf.mxu0 }
  0xe0   :  { %v120_v16 = vsel %vm119_vm3, %v93_v15, 0.0 }
  0xe1   :  { %v128_v17 = vmul.f32 %v271_v14, %v120_v16  ;;  %v278_v18 = vpop.f32.mrf.mxu0 }
  0xe3   :  { %v96_v19 = vpop.f32.mrf.mxu0  ;;  %v130_v20 = vsel %vm129_vm4, %v128_v17, 0.0 }
  0xe4   :  { %131 = vadd.xlane.f32.xlu0 %v130_v20 }
  0xe5   :  { %v279_v21 = vpop.f32.mrf.mxu0 }
 0x16d   :  { %v132_v34 = vpop.xlane.xlu0 %131 }
 0x16e   :  { %v144_v36 = vrot.slane %v132_v34, %v143_v26  ;;  %v148_v37 = vrot.slane %v132_v34, %v147_v27  ;;  %v152_v38 = vrot.slane %v132_v34, %v151_v28  ;;  %v156_v39 = vrot.slane %v132_v34, %v155_v29 }
 0x16f   :  { %v160_v40 = vrot.slane %v132_v34, %v159_v30  ;;  %v164_v41 = vrot.slane %v132_v34, %v163_v31  ;;  %v168_v42 = vrot.slane %v132_v34, %v167_v32  ;;  %v172_v43 = vrot.slane %v132_v34, %v171_v33 }
 0x170   :  { %v173_v44 = vcombine.low %v144_v36, %v148_v37  ;;  %v174_v45 = vcombine.low %v152_v38, %v156_v39 }
 0x171   :  { %v175_v46 = vcombine.low %v160_v40, %v164_v41  ;;  %v176_v47 = vcombine.low %v168_v42, %v172_v43 }
 0x172   :  { %v183_v48 = vrot.slane %v173_v44, %v182_v35  ;;  %v190_v49 = vrot.slane %v174_v45, %v182_v35 }
 0x173   :  { %v197_v50 = vrot.slane %v175_v46, %v182_v35  ;;  %v204_v51 = vrot.slane %v176_v47, %v182_v35 }
 0x174   :  { %v205_v52 = vcombine.low %v183_v48, %v190_v49 }
 0x175   :  { %v206_v53 = vcombine.low %v197_v50, %v204_v51 }
 0x176   :  { %v213_v54 = vrot.slane %v205_v52, %v182_v35 }
 0x177   :  { %v220_v55 = vrot.slane %v206_v53, %v182_v35 }
 0x179   :  { %v221_v56 = vcombine.low %v213_v54, %v220_v55 }
 0x17b   :  { %223 = vperm.xlu0 %289, %v221_v56  }
 0x1f6   :  { %v224_v58 = vpop.permute.xlu0 %223 }
 0x1f7   :  { %v228_v59 = vrot.slane %v224_v58, %v227_v57 }
 0x1f9   :  { %v235_v60 = vrot.slane %v228_v59, %v182_v35 }
 0x1fb   :  { %v242_v62 = vrot.slane %v235_v60, %v182_v35 }
 0x1fd   :  { %v244_v63 = vadd.f32 %v242_v62, %v139_v61 }
 0x1ff   :  { %246 = vst.msk [vmem:[#allocation8] sm:$0x1] %vm137_vm0, %v244_v63 }
 0x206   :  { %v250_v0 = vld [vmem:[#allocation8] sm:$0x1] }
 0x207   :  { %v251_v1 = vmul.f32 1.25, %v250_v0 }
 0x209   :  { %252 = vst.msk [vmem:[#allocation8] sm:$0x1] %vm137_vm0, %v251_v1 }
 0x20a   :  { %342 = shalt.err (!%p339_p0)
}
 0x20b   :  { %262 = dma.vmem_to_hbm [thread:$0]  %s260_s3, 16, %s413_s4, [#allocation5]  }
 0x20c   :  { %355 = dma.done.wait [#allocation5], 16  }
 0x20d   :  { %356 = vsyncadd [#allocation5], 4294967280 }
 0x20e   :  { %266 = vsyncpa [#allocation4], 1 }
 0x20f   :  { %267 = vsyncpa [#allocation7], 1 }
 0x210   :  { %268 = vsyncpa [#allocation5], 1 }

</bundles_post_ra>
